<compile_context>
chip_gen: v5e
topology: v5e:2x2
jax: 0.10.0
libtpu: 0.0.40
codegen_flags: <defaults>
</compile_context>

<pallas_src>
import functools

import jax
import jax.numpy as jnp
from jax.experimental import pallas as pl
from jax.experimental.pallas import tpu as pltpu

HIDDEN = 128     # hidden layer width from the PyTorch module
LANE = 128       # TPU lane width
SUBLANE = 8      # TPU sublane width (f32)


def _round_up(x: int, m: int) -> int:
    return ((x + m - 1) // m) * m


def _mlp_kernel(x_ref, w1_ref, b1_ref, w2_ref, b2_ref, o_ref):
    # Hidden layer: relu(x @ W1 + b1)  -- MXU matmul, f32 accumulate.
    h = jnp.dot(x_ref[...], w1_ref[...], preferred_element_type=jnp.float32)
    h = jnp.maximum(h + b1_ref[...], 0.0)            # (T,128) + (1,128) broadcast
    # Output layer: relu(h @ W2 + b2)  -- lane-dense (128-padded) output store.
    y = jnp.dot(h, w2_ref[...], preferred_element_type=jnp.float32)
    o_ref[...] = jnp.maximum(y + b2_ref[...], 0.0).astype(o_ref.dtype)


@functools.partial(jax.jit, static_argnames=("tile_n",))
def neuralnet_forward(x, w1_t, b1, w2_t, b2, *, tile_n=512):
    """Forward pass f(x) of the two-layer MLP.

    x:    (N, in_size) f32
    w1_t: (in_size, 128) f32   (= hidden.weight.T)
    b1:   (1, 128) f32
    w2_t: (128, out_size) f32  (= output.weight.T)
    b2:   (1, out_size) f32
    returns (N, out_size) f32
    """
    n, in_size = x.shape
    out_size = w2_t.shape[1]

    # --- host-side padding to TPU-friendly shapes --------------------------
    in_p = _round_up(in_size, LANE)          # K of matmul 1 -> full 128 lanes
    out_p = _round_up(out_size, LANE)        # lane-dense output store
    tile_n = min(tile_n, _round_up(n, SUBLANE))
    n_p = _round_up(n, tile_n)

    x_p = jnp.pad(x, ((0, n_p - n), (0, in_p - in_size)))
    w1_p = jnp.pad(w1_t, ((0, in_p - in_size), (0, 0)))
    w2_p = jnp.pad(w2_t, ((0, 0), (0, out_p - out_size)))
    b2_p = jnp.pad(b2, ((0, 0), (0, out_p - out_size)))

    grid = (n_p // tile_n,)

    # VMEM budget: double-buffered x/out tiles + resident weights + headroom,
    # capped below v7x's 64 MiB physical VMEM.
    tile_bytes = 4 * tile_n * (in_p + out_p) * 2                 # 2x double-buffer
    weight_bytes = 4 * (in_p * HIDDEN + HIDDEN * out_p + HIDDEN + out_p) * 2
    vmem_limit = int(min(48 * 1024 * 1024,
                         max(16 * 1024 * 1024, 4 * (tile_bytes + weight_bytes))))

    cost = pl.CostEstimate(
        flops=2 * n_p * (in_p * HIDDEN + HIDDEN * out_p),
        transcendentals=0,
        bytes_accessed=4 * (n_p * (in_p + out_p)
                            + in_p * HIDDEN + HIDDEN * out_p + HIDDEN + out_p),
    )

    y_p = pl.pallas_call(
        _mlp_kernel,
        out_shape=jax.ShapeDtypeStruct((n_p, out_p), jnp.float32),
        grid_spec=pltpu.PrefetchScalarGridSpec(
            num_scalar_prefetch=0,
            grid=grid,
            in_specs=[
                pl.BlockSpec((tile_n, in_p), lambda i: (i, 0)),    # x streams per tile
                pl.BlockSpec((in_p, HIDDEN), lambda i: (0, 0)),    # W1 resident
                pl.BlockSpec((1, HIDDEN), lambda i: (0, 0)),       # b1 resident
                pl.BlockSpec((HIDDEN, out_p), lambda i: (0, 0)),   # W2 resident
                pl.BlockSpec((1, out_p), lambda i: (0, 0)),        # b2 resident
            ],
            out_specs=pl.BlockSpec((tile_n, out_p), lambda i: (i, 0)),
        ),
        compiler_params=pltpu.CompilerParams(
            dimension_semantics=("parallel",),   # megacore sharding on v7x
            vmem_limit_bytes=vmem_limit,
        ),
        cost_estimate=cost,
    )(x_p, w1_p, b1, w2_p, b2_p)

    # Strip batch / lane padding.
    return y_p[:n, :out_size]


def _ref_forward(x, w1_t, b1, w2_t, b2):
    h = jnp.maximum(x @ w1_t + b1, 0.0)
    return jnp.maximum(h @ w2_t + b2, 0.0)


def _make_params(key, in_size, out_size):
    kw1, kb1, kw2, kb2 = jax.random.split(key, 4)
    # Deterministic init mimicking torch.nn.Linear's U(-1/sqrt(fan_in), ...),
    # stored pre-transposed for x @ W.
    bound1 = 1.0 / jnp.sqrt(in_size)
    w1_t = jax.random.uniform(kw1, (in_size, HIDDEN), jnp.float32, -bound1, bound1)
    b1 = jax.random.uniform(kb1, (1, HIDDEN), jnp.float32, -bound1, bound1)
    bound2 = 1.0 / jnp.sqrt(HIDDEN)
    w2_t = jax.random.uniform(kw2, (HIDDEN, out_size), jnp.float32, -bound2, bound2)
    b2 = jax.random.uniform(kb2, (1, out_size), jnp.float32, -bound2, bound2)
    return w1_t, b1, w2_t, b2


if __name__ == "__main__":
    key = jax.random.PRNGKey(0)

    # --- small case consistent with forward(): x is (N, in_size) -----------
    N, IN_SIZE, OUT_SIZE = 8, 64, 8
    kx, kp = jax.random.split(key)
    x = jax.random.normal(kx, (N, IN_SIZE), dtype=jnp.float32)
    w1_t, b1, w2_t, b2 = _make_params(kp, IN_SIZE, OUT_SIZE)

    y = neuralnet_forward(x, w1_t, b1, w2_t, b2)
    jax.block_until_ready(y)
    y_ref = _ref_forward(x, w1_t, b1, w2_t, b2)
    assert y.shape == (N, OUT_SIZE)
    assert jnp.allclose(y, y_ref, atol=1e-5, rtol=1e-5)

    # --- ragged case exercising multi-step grid + batch/lane padding -------
    N2, IN2, OUT2 = 300, 50, 10
    kx2, kp2 = jax.random.split(jax.random.PRNGKey(1))
    x2 = jax.random.normal(kx2, (N2, IN2), dtype=jnp.float32)
    p2 = _make_params(kp2, IN2, OUT2)

    y2 = neuralnet_forward(x2, *p2, tile_n=128)   # grid=(3,) after padding
    jax.block_until_ready(y2)
    y2_ref = _ref_forward(x2, *p2)
    assert y2.shape == (N2, OUT2)
    assert jnp.allclose(y2, y2_ref, atol=1e-5, rtol=1e-5)

    print("KERNEL_OK")
</pallas_src>

<mosaic_0001>
module attributes {stable_mosaic.version = 11 : i64} {
  func.func @_mlp_kernel(%arg0: i32, %arg1: memref<8x128xf32, #tpu.memory_space<vmem>>, %arg2: memref<128x128xf32, #tpu.memory_space<vmem>>, %arg3: memref<1x128xf32, #tpu.memory_space<vmem>>, %arg4: memref<128x128xf32, #tpu.memory_space<vmem>>, %arg5: memref<1x128xf32, #tpu.memory_space<vmem>>, %arg6: memref<8x128xf32, #tpu.memory_space<vmem>>) attributes {dimension_semantics = [#tpu.dimension_semantics<parallel>], iteration_bounds = array<i64: 1>, scalar_prefetch = 0 : i64, scratch_operands = 0 : i64, tpu.core_type = #tpu.core_type<tc>, window_params = [{transform_indices = @transform_0, window_bounds = array<i64: 8, 128>}, {pipeline_mode = #tpu.pipeline_mode<synchronous>, transform_indices = @transform_1, window_bounds = array<i64: 128, 128>}, {pipeline_mode = #tpu.pipeline_mode<synchronous>, transform_indices = @transform_2, window_bounds = array<i64: 1, 128>}, {pipeline_mode = #tpu.pipeline_mode<synchronous>, transform_indices = @transform_3, window_bounds = array<i64: 128, 128>}, {pipeline_mode = #tpu.pipeline_mode<synchronous>, transform_indices = @transform_4, window_bounds = array<i64: 1, 128>}, {transform_indices = @transform_5, window_bounds = array<i64: 8, 128>}]} {
    %c0 = arith.constant 0 : index
    %c0_0 = arith.constant 0 : index
    %0 = vector.load %arg1[%c0, %c0_0] : memref<8x128xf32, #tpu.memory_space<vmem>>, vector<8x128xf32>
    %c0_1 = arith.constant 0 : index
    %c0_2 = arith.constant 0 : index
    %1 = vector.load %arg2[%c0_1, %c0_2] : memref<128x128xf32, #tpu.memory_space<vmem>>, vector<128x128xf32>
    %cst = arith.constant dense<0.000000e+00> : vector<8x128xf32>
    %2 = tpu.matmul %0, %1, %cst {dimension_numbers = #tpu.dot_dimension_numbers<[1], [0], [0], [1], [0, 0, 1, 1], [], []>} : vector<8x128xf32>, vector<128x128xf32>, vector<8x128xf32> -> vector<8x128xf32>
    %c0_3 = arith.constant 0 : index
    %c0_4 = arith.constant 0 : index
    %3 = vector.load %arg3[%c0_3, %c0_4] : memref<1x128xf32, #tpu.memory_space<vmem>>, vector<1x128xf32>
    %4 = vector.broadcast %3 : vector<1x128xf32> to vector<8x128xf32>
    %5 = arith.addf %2, %4 : vector<8x128xf32>
    %cst_5 = arith.constant 0.000000e+00 : f32
    %6 = vector.broadcast %cst_5 : f32 to vector<8x128xf32>
    %7 = arith.maximumf %5, %6 : vector<8x128xf32>
    %c0_6 = arith.constant 0 : index
    %c0_7 = arith.constant 0 : index
    %8 = vector.load %arg4[%c0_6, %c0_7] : memref<128x128xf32, #tpu.memory_space<vmem>>, vector<128x128xf32>
    %cst_8 = arith.constant dense<0.000000e+00> : vector<8x128xf32>
    %9 = tpu.matmul %7, %8, %cst_8 {dimension_numbers = #tpu.dot_dimension_numbers<[1], [0], [0], [1], [0, 0, 1, 1], [], []>} : vector<8x128xf32>, vector<128x128xf32>, vector<8x128xf32> -> vector<8x128xf32>
    %c0_9 = arith.constant 0 : index
    %c0_10 = arith.constant 0 : index
    %10 = vector.load %arg5[%c0_9, %c0_10] : memref<1x128xf32, #tpu.memory_space<vmem>>, vector<1x128xf32>
    %11 = vector.broadcast %10 : vector<1x128xf32> to vector<8x128xf32>
    %12 = arith.addf %9, %11 : vector<8x128xf32>
    %cst_11 = arith.constant 0.000000e+00 : f32
    %13 = vector.broadcast %cst_11 : f32 to vector<8x128xf32>
    %14 = arith.maximumf %12, %13 : vector<8x128xf32>
    %c0_12 = arith.constant 0 : index
    %c0_13 = arith.constant 0 : index
    %15 = vector.load %arg6[%c0_12, %c0_13] : memref<8x128xf32, #tpu.memory_space<vmem>>, vector<8x128xf32>
    tpu.vector_store %arg6[%c0_12, %c0_13], %14 {strides = array<i32>} : memref<8x128xf32, #tpu.memory_space<vmem>>, vector<8x128xf32>,
    return
  }
  func.func @transform_0(%arg0: i32) -> (i32, i32) {
    %c0_i32 = arith.constant 0 : i32
    %c0_i32_0 = arith.constant 0 : i32
    return %arg0, %c0_i32 : i32, i32
  }
  func.func @transform_1(%arg0: i32) -> (i32, i32) {
    %c0_i32 = arith.constant 0 : i32
    %c0_i32_0 = arith.constant 0 : i32
    %c0_i32_1 = arith.constant 0 : i32
    return %c0_i32, %c0_i32_0 : i32, i32
  }
  func.func @transform_2(%arg0: i32) -> (i32, i32) {
    %c0_i32 = arith.constant 0 : i32
    %c0_i32_0 = arith.constant 0 : i32
    %c0_i32_1 = arith.constant 0 : i32
    return %c0_i32, %c0_i32_0 : i32, i32
  }
  func.func @transform_3(%arg0: i32) -> (i32, i32) {
    %c0_i32 = arith.constant 0 : i32
    %c0_i32_0 = arith.constant 0 : i32
    %c0_i32_1 = arith.constant 0 : i32
    return %c0_i32, %c0_i32_0 : i32, i32
  }
  func.func @transform_4(%arg0: i32) -> (i32, i32) {
    %c0_i32 = arith.constant 0 : i32
    %c0_i32_0 = arith.constant 0 : i32
    %c0_i32_1 = arith.constant 0 : i32
    return %c0_i32, %c0_i32_0 : i32, i32
  }
  func.func @transform_5(%arg0: i32) -> (i32, i32) {
    %c0_i32 = arith.constant 0 : i32
    %c0_i32_0 = arith.constant 0 : i32
    return %arg0, %c0_i32 : i32, i32
  }
}

</mosaic_0001>

<bundles_post_ra>
// kernel: neuralnet_forward.1
= control target key start
LH: loop header
LB: loop body
LE: loop exit
PB: predicated region body
PF: predicated region fallthrough
CT: control target
= control target key end

     0   :  { %s289_s0 = inlined_call_operand.vmem [shape: f32[8,128], index: 0, kind: input, shape index: {}]   ;;  %s290_s1 = inlined_call_operand.vmem [shape: f32[128,128], index: 1, kind: input, shape index: {}]   ;;  %s291_s2 = inlined_call_operand.vmem [shape: f32[1,128], index: 2, kind: input, shape index: {}]   ;;  %s292_s3 = inlined_call_operand.vmem [shape: f32[128,128], index: 3, kind: input, shape index: {}]   ;;  %s293_s4 = inlined_call_operand.vmem [shape: f32[1,128], index: 4, kind: input, shape index: {}]   ;;  %s294_s5 = inlined_call_operand.hbm [shape: f32[8,128], index: 5, kind: output, shape index: {}]  }
   0x1   :  { %v37_v0 = vld [vmem:[%s290_s1 + $0x78] sm:$0xff]  ;;  %v36_v1 = vld [vmem:[%s290_s1 + $0x70] sm:$0xff]  ;;  %v35_v2 = vld [vmem:[%s290_s1 + $0x68] sm:$0xff] }
   0x2   :  { %42 = vmatpush.msra.mxu0 %v37_v0  ;;  %v34_v3 = vld [vmem:[%s290_s1 + $0x60] sm:$0xff]  ;;  %v78_v4 = vld [vmem:[%s292_s3 + $0x78] sm:$0xff]  ;;  %v77_v6 = vld [vmem:[%s292_s3 + $0x70] sm:$0xff] }
   0x3   :  { %v33_v5 = vld [vmem:[%s290_s1 + $0x58] sm:$0xff]  ;;  %83 = vmatpush.msra.mxu1 %v78_v4  ;;  %v76_v7 = vld [vmem:[%s292_s3 + $0x68] sm:$0xff]  ;;  %v32_v8 = vld [vmem:[%s290_s1 + $0x50] sm:$0xff] }
   0x4   :  { %43 = vmatpush.msra.mxu0 %v36_v1  ;;  %v75_v9 = vld [vmem:[%s292_s3 + $0x60] sm:$0xff]  ;;  %v31_v10 = vld [vmem:[%s290_s1 + $0x48] sm:$0xff]  ;;  %v74_v11 = vld [vmem:[%s292_s3 + $0x58] sm:$0xff] }
   0x5   :  { %84 = vmatpush.msra.mxu1 %v77_v6 }
   0x6   :  { %44 = vmatpush.msra.mxu0 %v35_v2 }
   0x7   :  { %85 = vmatpush.msra.mxu1 %v76_v7 }
   0x8   :  { %45 = vmatpush.msra.mxu0 %v34_v3 }
   0xa   :  { %46 = vmatpush.msra.mxu0 %v33_v5 }
   0xc   :  { %47 = vmatpush.msra.mxu0 %v32_v8 }
   0xd   :  { %10 = vsyncpa [#allocation3], 0  ;;  %v30_v12 = vld [vmem:[%s290_s1 + $0x40] sm:$0xff]  ;;  %86 = vmatpush.msra.mxu1 %v75_v9  ;;  %v73_v13 = vld [vmem:[%s292_s3 + $0x50] sm:$0xff]  ;;  %s150_s11 = smov [#allocation2]  }
   0xe   :  { %48 = vmatpush.msra.mxu0 %v31_v10  ;;  %v29_v14 = vld [vmem:[%s290_s1 + $0x38] sm:$0xff]  ;;  %v72_v15 = vld [vmem:[%s292_s3 + $0x48] sm:$0xff]  ;;  %v28_v16 = vld [vmem:[%s290_s1 + $0x30] sm:$0xff]  ;;  %s110_s12 = sshll.u32 %s150_s11, 4  ;;  %s111_s12 = int_to_ptr.vmem [resolvable:$true] %s110_s12 }
   0xf   :  { %87 = vmatpush.msra.mxu1 %v74_v11  ;;  %v71_v17 = vld [vmem:[%s292_s3 + $0x40] sm:$0xff]  ;;  %v27_v18 = vld [vmem:[%s290_s1 + $0x28] sm:$0xff]  ;;  %v70_v19 = vld [vmem:[%s292_s3 + $0x38] sm:$0xff] }
  0x10   :  { %49 = vmatpush.msra.mxu0 %v30_v12  ;;  %v26_v20 = vld [vmem:[%s290_s1 + $0x20] sm:$0xff]  ;;  %v69_v21 = vld [vmem:[%s292_s3 + $0x30] sm:$0xff]  ;;  %v25_v22 = vld [vmem:[%s290_s1 + $0x18] sm:$0xff] }
  0x11   :  { %88 = vmatpush.msra.mxu1 %v73_v13  ;;  %v68_v23 = vld [vmem:[%s292_s3 + $0x28] sm:$0xff]  ;;  %v24_v24 = vld [vmem:[%s290_s1 + $0x10] sm:$0xff]  ;;  %v67_v25 = vld [vmem:[%s292_s3 + $0x20] sm:$0xff] }
  0x12   :  { %50 = vmatpush.msra.mxu0 %v29_v14  ;;  %v23_v26 = vld [vmem:[%s290_s1 + $0x8] sm:$0xff]  ;;  %v66_v27 = vld [vmem:[%s292_s3 + $0x18] sm:$0xff]  ;;  %v22_v28 = vld [vmem:[%s290_s1] sm:$0xff] }
  0x13   :  { %89 = vmatpush.msra.mxu1 %v72_v15  ;;  %v21_v29 = vld [vmem:[%s289_s0] sm:$0xff]  ;;  %v65_v30 = vld [vmem:[%s292_s3 + $0x10] sm:$0xff]  ;;  %v64_v31 = vld [vmem:[%s292_s3 + $0x8] sm:$0xff] }
  0x14   :  { %51 = vmatpush.msra.mxu0 %v28_v16  ;;  %v63_v32 = vld [vmem:[%s292_s3] sm:$0xff]  ;;  %s112_s3 = sshll.u32 %s294_s5, 4  ;;  %s113_s3 = int_to_ptr.hbm [resolvable:$true] %s112_s3 }
  0x15   :  { %90 = vmatpush.msra.mxu1 %v71_v17  ;;  %v122_v33 = vld [vmem:[%s291_s2] ss:$0 sm:$0xff] }
  0x16   :  { %52 = vmatpush.msra.mxu0 %v27_v18  ;;  %v123_v37 = vld [vmem:[%s293_s4] ss:$0 sm:$0xff] }
  0x17   :  { %91 = vmatpush.msra.mxu1 %v70_v19 }
  0x18   :  { %53 = vmatpush.msra.mxu0 %v26_v20 }
  0x19   :  { %92 = vmatpush.msra.mxu1 %v69_v21 }
  0x1a   :  { %54 = vmatpush.msra.mxu0 %v25_v22 }
  0x1b   :  { %93 = vmatpush.msra.mxu1 %v68_v23 }
  0x1c   :  { %55 = vmatpush.msra.mxu0 %v24_v24 }
  0x1d   :  { %94 = vmatpush.msra.mxu1 %v67_v25 }
  0x1e   :  { %56 = vmatpush.msra.mxu0 %v23_v26 }
  0x1f   :  { %95 = vmatpush.msra.mxu1 %v66_v27 }
  0x20   :  { %57 = vmatpush.msra.mxu0 %v22_v28 }
  0x21   :  { %58 = vmatmul.f32.vlgmr.msra.gmra.mxu0 %v21_v29  ;;  %96 = vmatpush.msra.mxu1 %v65_v30 }
  0x23   :  { %97 = vmatpush.msra.mxu1 %v64_v31 }
  0x25   :  { %98 = vmatpush.msra.mxu1 %v63_v32 }
  0x9e   :  { %v59_v34 = vpop.f32.mrf.mxu0 }
  0x9f   :  { %v60_v35 = vadd.f32 %v122_v33, %v59_v34 }
  0xa1   :  { %v62_v36 = vmax.f32 %v60_v35, 0.0 }
  0xa3   :  { %99 = vmatmul.f32.vlgmr.msra.gmra.mxu1 %v62_v36 }
 0x120   :  { %v100_v38 = vpop.f32.mrf.mxu1 }
 0x121   :  { %v101_v39 = vadd.f32 %v123_v37, %v100_v38 }
 0x123   :  { %v103_v40 = vmax.f32 %v101_v39, 0.0 }
 0x125   :  { %104 = vst [vmem:[#allocation2] sm:$0xff] %v103_v40 }
 0x126   :  { %115 = dma.vmem_to_hbm [thread:$0]  %s111_s12, 128, %s113_s3, [#allocation3]  }
 0x127   :  { %148 = dma.done.wait [#allocation3], 128  }
 0x128   :  { %149 = vsyncadd [#allocation3], 4294967168 }
 0x129   :  { %120 = vsyncpa [#allocation3], 1 }

</bundles_post_ra>
